<compile_context>
chip_gen: v5e
topology: v5e:2x2
jax: 0.10.0
libtpu: 0.0.40
codegen_flags: <defaults>
</compile_context>

<pallas_src>
import functools
import math

import jax
import jax.numpy as jnp
from jax.experimental import pallas as pl
from jax.experimental.pallas import tpu as pltpu

_LN2 = math.log(2.0)


def _round_up(x: int, m: int) -> int:
    return ((x + m - 1) // m) * m


def _jsd_partial_kernel(p_ref, q_ref, out_ref, *, n_rows: int, n_cols: int,
                        tm: int, td: int):
    """Writes an (8, TD) partial sum of p*(log p - m) + q*(log q - m)."""
    i = pl.program_id(0)
    j = pl.program_id(1)

    p = p_ref[...].astype(jnp.float32)
    q = q_ref[...].astype(jnp.float32)

    # m = log(0.5*(p+q)) == log(p+q) - ln2   (exact algebraic identity)
    m = jnp.log(p + q) - jnp.float32(_LN2)

    # Build validity mask only when a block can overhang the array (static).
    valid = None
    if n_rows % tm != 0:
        rows = jax.lax.broadcasted_iota(jnp.int32, p.shape, 0) + i * tm
        valid = rows < n_rows
    if n_cols % td != 0:
        cols = jax.lax.broadcasted_iota(jnp.int32, p.shape, 1) + j * td
        cmask = cols < n_cols
        valid = cmask if valid is None else jnp.logical_and(valid, cmask)

    def _guard(x):
        g = x > 0  # xlogy semantics: 0*log(0) -> 0; also rejects garbage pad
        if valid is not None:
            g = jnp.logical_and(valid, g)
        return g

    # jnp.where is a select, so NaN/-inf in the unselected branch never
    # propagates (covers both padded rows/cols and exact zeros).
    term_p = jnp.where(_guard(p), p * (jnp.log(p) - m), 0.0)
    term_q = jnp.where(_guard(q), q * (jnp.log(q) - m), 0.0)
    term = term_p + term_q  # (TM, TD), f32

    # Collapse the TM rows onto 8 sublanes: pure elementwise VALU adds, no
    # XLU cross-lane reduce and no SMEM scalar dependency chain per step.
    out_ref[...] = jnp.sum(term.reshape(tm // 8, 8, td), axis=0)


def jsd_pallas(p: jax.Array, q: jax.Array) -> jax.Array:
    """Jensen-Shannon divergence between row-wise distributions p and q."""
    D = p.shape[-1]
    p2 = p.reshape(-1, D)          # keep native dtype; kernel upcasts
    q2 = q.reshape(-1, D)
    N = p2.shape[0]
    itemsize = jnp.dtype(p2.dtype).itemsize

    # --- Tile sizing ---------------------------------------------------
    # Column tile: full D when it fits, otherwise a lane-aligned chunk so
    # vocab-scale last dims still pipeline.
    TD_MAX = 2048                      # multiple of 128
    TD = D if D <= TD_MAX else TD_MAX

    # Row tile: target ~1 MiB per input per pipeline buffer (measured ~85% of
    # HBM roofline for elementwise kernels); multiple of 16 for bf16 packing
    # and for the sublane-group reshape (needs TM % 8 == 0).
    TILE_BYTES = 1 << 20
    rows_fit = TILE_BYTES // max(TD * itemsize, 1)
    TM = max(16, min(4096, (rows_fit // 16) * 16, _round_up(N, 16)))

    nm = pl.cdiv(N, TM)
    nd = pl.cdiv(D, TD)

    partials = pl.pallas_call(
        functools.partial(_jsd_partial_kernel, n_rows=N, n_cols=D, tm=TM, td=TD),
        out_shape=jax.ShapeDtypeStruct((nm * 8, nd * TD), jnp.float32),
        grid_spec=pltpu.PrefetchScalarGridSpec(
            num_scalar_prefetch=0,
            grid=(nm, nd),
            in_specs=[
                pl.BlockSpec((TM, TD), lambda i, j: (i, j)),
                pl.BlockSpec((TM, TD), lambda i, j: (i, j)),
            ],
            out_specs=pl.BlockSpec((8, TD), lambda i, j: (i, j)),
        ),
        compiler_params=pltpu.CompilerParams(
            dimension_semantics=("parallel", "parallel"),
            vmem_limit_bytes=32 * 1024 * 1024,   # safe on v5e/v6e/v7x
        ),
        cost_estimate=pl.CostEstimate(
            flops=10 * N * D,
            transcendentals=3 * N * D,
            bytes_accessed=2 * N * D * itemsize + nm * nd * 8 * TD * 4,
        ),
    )(p2, q2)

    # Tiny finalize outside the kernel: scalar reduce + 'batchmean' scaling.
    return 0.5 * jnp.sum(partials) / jnp.float32(N)


def jsd_reference(p: jax.Array, q: jax.Array) -> jax.Array:
    """Pure-JAX reference mirroring the PyTorch module."""
    D = p.shape[-1]
    p2 = p.reshape(-1, D).astype(jnp.float32)
    q2 = q.reshape(-1, D).astype(jnp.float32)
    N = p2.shape[0]
    m = jnp.log(0.5 * (p2 + q2))
    kl_pm = jnp.sum(p2 * (jnp.log(p2) - m)) / N
    kl_qm = jnp.sum(q2 * (jnp.log(q2) - m)) / N
    return 0.5 * (kl_pm + kl_qm)


if __name__ == "__main__":
    key = jax.random.PRNGKey(0)
    k1, k2 = jax.random.split(key)

    # Small shapes: batch=2, seq=8, dist_dim=128 -> flattened rows N=16.
    B, S, D = 2, 8, 128
    logits_p = jax.random.normal(k1, (B, S, D), dtype=jnp.float32)
    logits_q = jax.random.normal(k2, (B, S, D), dtype=jnp.float32)
    p = jax.nn.softmax(logits_p, axis=-1)
    q = jax.nn.softmax(logits_q, axis=-1)

    out = jsd_pallas(p, q)
    jax.block_until_ready(out)

    ref = jsd_reference(p, q)
    assert jnp.allclose(out, ref, rtol=1e-5, atol=1e-6), (out, ref)

    print("KERNEL_OK")
</pallas_src>

<mosaic_0001>
module attributes {stable_mosaic.version = 11 : i64} {
  func.func @_jsd_partial_kernel(%arg0: i32, %arg1: i32, %arg2: memref<16x128xf32, #tpu.memory_space<vmem>>, %arg3: memref<16x128xf32, #tpu.memory_space<vmem>>, %arg4: memref<8x128xf32, #tpu.memory_space<vmem>>) attributes {dimension_semantics = [#tpu.dimension_semantics<parallel>, #tpu.dimension_semantics<parallel>], iteration_bounds = array<i64: 1, 1>, scalar_prefetch = 0 : i64, scratch_operands = 0 : i64, tpu.core_type = #tpu.core_type<tc>, window_params = [{transform_indices = @transform_0, window_bounds = array<i64: 16, 128>}, {transform_indices = @transform_1, window_bounds = array<i64: 16, 128>}, {transform_indices = @transform_2, window_bounds = array<i64: 8, 128>}]} {
    %c0 = arith.constant 0 : index
    %c0_0 = arith.constant 0 : index
    %0 = vector.load %arg2[%c0, %c0_0] : memref<16x128xf32, #tpu.memory_space<vmem>>, vector<16x128xf32>
    %c0_1 = arith.constant 0 : index
    %c0_2 = arith.constant 0 : index
    %1 = vector.load %arg3[%c0_1, %c0_2] : memref<16x128xf32, #tpu.memory_space<vmem>>, vector<16x128xf32>
    %2 = arith.addf %0, %1 : vector<16x128xf32>
    %3 = math.log %2 : vector<16x128xf32>
    %cst = arith.constant 0.693147182 : f32
    %4 = vector.broadcast %cst : f32 to vector<16x128xf32>
    %5 = arith.subf %3, %4 : vector<16x128xf32>
    %cst_3 = arith.constant 0.000000e+00 : f32
    %6 = vector.broadcast %cst_3 : f32 to vector<16x128xf32>
    %7 = arith.cmpf ogt, %0, %6 : vector<16x128xf32>
    %8 = math.log %0 : vector<16x128xf32>
    %9 = arith.subf %8, %5 : vector<16x128xf32>
    %10 = arith.mulf %0, %9 : vector<16x128xf32>
    %cst_4 = arith.constant 0.000000e+00 : f32
    %11 = vector.broadcast %cst_4 : f32 to vector<16x128xf32>
    %12 = arith.select %7, %10, %11 : vector<16x128xi1>, vector<16x128xf32>
    %cst_5 = arith.constant 0.000000e+00 : f32
    %13 = vector.broadcast %cst_5 : f32 to vector<16x128xf32>
    %14 = arith.cmpf ogt, %1, %13 : vector<16x128xf32>
    %15 = math.log %1 : vector<16x128xf32>
    %16 = arith.subf %15, %5 : vector<16x128xf32>
    %17 = arith.mulf %1, %16 : vector<16x128xf32>
    %cst_6 = arith.constant 0.000000e+00 : f32
    %18 = vector.broadcast %cst_6 : f32 to vector<16x128xf32>
    %19 = arith.select %14, %17, %18 : vector<16x128xi1>, vector<16x128xf32>
    %20 = arith.addf %12, %19 : vector<16x128xf32>
    %21 = vector.shape_cast %20 : vector<16x128xf32> to vector<2x8x128xf32>
    %cst_7 = arith.constant dense<0.000000e+00> : vector<8x128xf32>
    %22 = vector.multi_reduction <add>, %21, %cst_7 [0] : vector<2x8x128xf32> to vector<8x128xf32>
    %c0_8 = arith.constant 0 : index
    %c0_9 = arith.constant 0 : index
    %23 = vector.load %arg4[%c0_8, %c0_9] : memref<8x128xf32, #tpu.memory_space<vmem>>, vector<8x128xf32>
    tpu.vector_store %arg4[%c0_8, %c0_9], %22 {strides = array<i32>} : memref<8x128xf32, #tpu.memory_space<vmem>>, vector<8x128xf32>,
    return
  }
  func.func @transform_0(%arg0: i32, %arg1: i32) -> (i32, i32) {
    %c0_i32 = arith.constant 0 : i32
    return %arg0, %arg1 : i32, i32
  }
  func.func @transform_1(%arg0: i32, %arg1: i32) -> (i32, i32) {
    %c0_i32 = arith.constant 0 : i32
    return %arg0, %arg1 : i32, i32
  }
  func.func @transform_2(%arg0: i32, %arg1: i32) -> (i32, i32) {
    %c0_i32 = arith.constant 0 : i32
    return %arg0, %arg1 : i32, i32
  }
}

</mosaic_0001>

<bundles_post_ra>
// kernel: tpu_custom_call.1
= control target key start
LH: loop header
LB: loop body
LE: loop exit
PB: predicated region body
PF: predicated region fallthrough
CT: control target
= control target key end

     0   :  { %7 = vsyncpa [#allocation3], 0  ;;  %s228_s0 = inlined_call_operand.hbm [shape: f32[16,128], index: 0, kind: input, shape index: {}]   ;;  %s229_s1 = inlined_call_operand.hbm [shape: f32[16,128], index: 1, kind: input, shape index: {}]   ;;  %s230_s2 = inlined_call_operand.hbm [shape: f32[8,128], index: 2, kind: output, shape index: {}]  }
   0x1   :  { %8 = vsyncpa [#allocation6], 0 }
   0x2   :  { %9 = vsyncpa [#allocation4], 0  ;;  %s14_s11 = sshll.u32 %s228_s0, 4  ;;  %s199_s12 = smov [#allocation2]   ;;  %s15_s11 = int_to_ptr.hbm [resolvable:$true] %s14_s11 }
   0x3   :  { %s16_s13 = sshll.u32 %s199_s12, 4  ;;  %s27_s16 = sshll.u32 %s229_s1, 4  ;;  %s17_s13 = int_to_ptr.vmem [resolvable:$true] %s16_s13  ;;  %s28_s16 = int_to_ptr.hbm [resolvable:$true] %s27_s16 }
   0x4   :  { %s200_s17 = smov 128   ;;  %s201_s18 = smov 8  }
   0x5   :  { %22 = dma.hbm_to_vmem [thread:$0]  %s15_s11, 256, %s17_s13, [#allocation3], %s200_s17, %s200_s17, %s201_s18  }
   0x6   :  { %s202_s19 = smov [#allocation5]  }
   0x7   :  { %s29_s20 = sshll.u32 %s202_s19, 4  ;;  %s30_s20 = int_to_ptr.vmem [resolvable:$true] %s29_s20 }
   0x8   :  { %35 = dma.hbm_to_vmem [thread:$0]  %s28_s16, 256, %s30_s20, [#allocation6], %s200_s17, %s200_s17, %s201_s18  }
   0x9   :  { %193 = dma.done.wait [#allocation3], 256  }
   0xa   :  { %194 = vsyncadd [#allocation3], 4294967040 }
   0xb   :  { %195 = dma.done.wait [#allocation6], 256  }
   0xc   :  { %196 = vsyncadd [#allocation6], 4294967040  ;;  %v44_v0 = vld [vmem:[#allocation2] sm:$0xff]  ;;  %v45_v1 = vld [vmem:[#allocation2 + $0x8] sm:$0xff]  ;;  %s203_s0 = smov [#allocation7]   ;;  %s91_s23 = sshll.u32 %s230_s2, 4  ;;  %s92_s23 = int_to_ptr.hbm [resolvable:$true] %s91_s23 }
   0xd   :  { %v46_v2 = vld [vmem:[#allocation5] sm:$0xff]  ;;  %v47_v3 = vld [vmem:[#allocation5 + $0x8] sm:$0xff]  ;;  %109 = vlog2.f32 %v44_v0  ;;  %vm56_vm0 = vcmp.gt.f32.partialorder %v44_v0, 0.0  ;;  %vm57_vm2 = vcmp.gt.f32.partialorder %v45_v1, 0.0  ;;  %s89_s1 = sshll.u32 %s203_s0, 4  ;;  %s90_s1 = int_to_ptr.vmem [resolvable:$true] %s89_s1 }
   0xe   :  { %v48_v4 = vadd.f32 %v46_v2, %v44_v0  ;;  %v49_v5 = vadd.f32 %v47_v3, %v45_v1  ;;  %111 = vlog2.f32 %v45_v1  ;;  %vm68_vm1 = vcmp.gt.f32.partialorder %v46_v2, 0.0 }
   0xf   :  { %vm69_vm3 = vcmp.gt.f32.partialorder %v47_v3, 0.0 }
  0x10   :  { %113 = vlog2.f32 %v48_v4 }
  0x11   :  { %115 = vlog2.f32 %v49_v5 }
  0x12   :  { %117 = vlog2.f32 %v46_v2 }
  0x13   :  { %119 = vlog2.f32 %v47_v3  ;;  %v110_v6 = vpop.eup %109 }
  0x14   :  { %v112_v7 = vpop.eup %111  ;;  %v59_v11 = vmul.f32 0.6931472, %v110_v6 }
  0x15   :  { %v61_v14 = vmul.f32 0.6931472, %v112_v7 }
  0x16   :  { %v114_v8 = vpop.eup %113 }
  0x17   :  { %v116_v9 = vpop.eup %115  ;;  %v51_v10 = vmul.f32 0.6931472, %v114_v8 }
  0x18   :  { %v118_v12 = vpop.eup %117  ;;  %v53_v13 = vmul.f32 0.6931472, %v116_v9 }
  0x19   :  { %v120_v15 = vpop.eup %119  ;;  %v102_v16 = vadd.f32 -0.6931472, %v51_v10  ;;  %v71_v17 = vmul.f32 0.6931472, %v118_v12 }
  0x1a   :  { %v103_v18 = vadd.f32 -0.6931472, %v53_v13  ;;  %v73_v19 = vmul.f32 0.6931472, %v120_v15 }
  0x1b   :  { %v62_v20 = vsub.f32 %v59_v11, %v102_v16  ;;  %v74_v21 = vsub.f32 %v71_v17, %v102_v16 }
  0x1c   :  { %v63_v22 = vsub.f32 %v61_v14, %v103_v18  ;;  %v75_v23 = vsub.f32 %v73_v19, %v103_v18 }
  0x1d   :  { %v64_v24 = vmul.f32 %v62_v20, %v44_v0  ;;  %v76_v25 = vmul.f32 %v74_v21, %v46_v2 }
  0x1e   :  { %v65_v26 = vmul.f32 %v63_v22, %v45_v1  ;;  %v77_v27 = vmul.f32 %v75_v23, %v47_v3 }
  0x1f   :  { %v66_v28 = vsel %vm56_vm0, %v64_v24, 0.0  ;;  %v78_v29 = vsel %vm68_vm1, %v76_v25, 0.0 }
  0x20   :  { %v67_v30 = vsel %vm57_vm2, %v65_v26, 0.0  ;;  %v79_v31 = vsel %vm69_vm3, %v77_v27, 0.0  ;;  %v80_v32 = vadd.f32 %v78_v29, %v66_v28 }
  0x21   :  { %v81_v33 = vadd.f32 %v79_v31, %v67_v30 }
  0x23   :  { %v82_v34 = vadd.f32 %v81_v33, %v80_v32 }
  0x25   :  { %83 = vst [vmem:[#allocation7] sm:$0xff] %v82_v34 }
  0x26   :  { %94 = dma.vmem_to_hbm [thread:$0]  %s90_s1, 128, %s92_s23, [#allocation4]  }
  0x27   :  { %197 = dma.done.wait [#allocation4], 128  }
  0x28   :  { %198 = vsyncadd [#allocation4], 4294967168 }
  0x29   :  { %99 = vsyncpa [#allocation3], 1 }
  0x2a   :  { %100 = vsyncpa [#allocation6], 1 }
  0x2b   :  { %101 = vsyncpa [#allocation4], 1 }

</bundles_post_ra>
